<compile_context>
chip_gen: v7x
topology: tpu7x:2x2x1
jax: 0.10.0
libtpu: 0.0.40
codegen_flags: <defaults>
</compile_context>

<pallas_src>
import functools

import jax
import jax.numpy as jnp
from jax.experimental import pallas as pl
from jax.experimental.pallas import tpu as pltpu

# ---- model hyperparameters (small, consistent with the module) ----
EMB_DIM = 32
NUM_HEADS = 4
HEAD_DIM = EMB_DIM // NUM_HEADS
SCALING = HEAD_DIM ** (-0.5)
DROPOUT_RATIO = 0.2  # inference mode -> identity
BATCH = 2
SEQ = 8


def _mha_kernel(x_ref, w_qkv_ref, b_qkv_ref, wo_ref, bo_ref, o_ref, *,
                batch, seq, num_heads, head_dim):
    B, S, H, D = batch, seq, num_heads, head_dim
    N = H * B  # collapsed (head, batch) einsum batch dimension, n = h*B + b

    x = x_ref[...]  # (B, S, E)

    # Replicate the activations across heads along the LEADING axis only
    # (pure major-axis concat -> no cross-lane movement).
    xn = jnp.concatenate([x] * H, axis=0)  # (N, S, E), xn[h*B + b] = x[b]

    # Fused, head-major Q/K/V projection: one batched MXU matmul.
    # 1/sqrt(D) is already folded into the Q columns / bias of w_qkv / b_qkv.
    qkv = jnp.einsum("nse,nef->nsf", xn, w_qkv_ref[...],
                     preferred_element_type=jnp.float32) + b_qkv_ref[...]  # (N, S, 3D)
    q = qkv[:, :, 0:D]
    k = qkv[:, :, D:2 * D]
    v = qkv[:, :, 2 * D:3 * D]

    # Scaled dot-product attention, batched over all (head, batch) pairs.
    s = jnp.einsum("nqd,nkd->nqk", q, k,
                   preferred_element_type=jnp.float32)  # (N, S, S)
    # TODO(synk): optional attention mask (module default mask=None) not implemented.
    s = s - jnp.max(s, axis=-1, keepdims=True)  # numerically stable softmax
    p = jnp.exp(s)
    attn = p * pl.reciprocal(jnp.sum(p, axis=-1, keepdims=True), approx=True)
    # self.att_drop is identity at inference time.
    ctx = jnp.einsum("nqk,nkd->nqd", attn, v,
                     preferred_element_type=jnp.float32)  # (N, S, D)

    # Output projection applied per head (wo_ref[n] is the (D, E) slab for head
    # n // B); the head merge is a plain sum over the leading axis, so no
    # lane-concat is needed.
    po = jnp.einsum("nqd,nde->nqe", ctx, wo_ref[...],
                    preferred_element_type=jnp.float32)  # (N, S, E)
    out = po[0:B]
    for h in range(1, H):
        out = out + po[h * B:(h + 1) * B]
    out = out + bo_ref[0]  # (B, S, E)

    o_ref[...] = out.astype(o_ref.dtype)


def multi_head_attention(x, params):
    """x: (B, S, E) float32. params: head-major fused weights (see prepare_params)."""
    B, S, E = x.shape
    kernel = functools.partial(
        _mha_kernel, batch=B, seq=S, num_heads=NUM_HEADS, head_dim=HEAD_DIM)

    def vmem_spec():
        return pl.BlockSpec(memory_space=pltpu.MemorySpace.VMEM)

    return pl.pallas_call(
        kernel,
        out_shape=jax.ShapeDtypeStruct((B, S, E), x.dtype),
        in_specs=[vmem_spec() for _ in range(5)],
        out_specs=vmem_spec(),
    )(x, params["w_qkv"], params["b_qkv"], params["wo"], params["bo"])


def prepare_params(wq, bq, wk, bk, wv, bv, wo, bo):
    """One-time transform of nn.Linear weights ((out,in) layout) into kernel form.

    Returns:
      w_qkv: (H*B, E, 3D) head-major fused QKV weight, Q columns pre-scaled by
             1/sqrt(D), replicated per batch element (n = h*B + b).
      b_qkv: (H*B, 1, 3D) matching fused bias (Q part pre-scaled).
      wo   : (H*B, D, E) per-head output-projection slabs.
      bo   : (1, E) output bias.
    """
    E, H, D, B = EMB_DIM, NUM_HEADS, HEAD_DIM, BATCH
    # nn.Linear computes y = x @ W.T + b -> work with W.T of shape (in, out).
    wq_t = wq.T * SCALING        # fold attention scaling into the Q projection
    bq_s = bq * SCALING
    wk_t, wv_t, wo_t = wk.T, wv.T, wo.T

    def head_major(w_t):         # (E, E) -> (H, E, D): columns grouped per head
        return w_t.reshape(E, H, D).transpose(1, 0, 2)

    w_qkv_h = jnp.concatenate(
        [head_major(wq_t), head_major(wk_t), head_major(wv_t)], axis=-1)  # (H, E, 3D)
    b_qkv_h = jnp.concatenate(
        [bq_s.reshape(H, D), bk.reshape(H, D), bv.reshape(H, D)], axis=-1)  # (H, 3D)
    wo_h = wo_t.reshape(H, D, E)                                            # (H, D, E)

    return {
        "w_qkv": jnp.repeat(w_qkv_h, B, axis=0),                # (H*B, E, 3D)
        "b_qkv": jnp.repeat(b_qkv_h[:, None, :], B, axis=0),    # (H*B, 1, 3D)
        "wo": jnp.repeat(wo_h, B, axis=0),                      # (H*B, D, E)
        "bo": bo.reshape(1, E),                                 # (1, E)
    }


def _init_linear(key, in_f, out_f):
    """Deterministic init mimicking nn.Linear default (uniform +/- 1/sqrt(in))."""
    kw, kb = jax.random.split(key)
    bound = 1.0 / (in_f ** 0.5)
    w = jax.random.uniform(kw, (out_f, in_f), jnp.float32, -bound, bound)
    b = jax.random.uniform(kb, (out_f,), jnp.float32, -bound, bound)
    return w, b


def _reference_mha(x, raw):
    """Pure-JAX reference of the PyTorch forward (eval mode, no mask)."""
    B, S, E = x.shape
    H, D = NUM_HEADS, HEAD_DIM
    q = x @ raw["wq"].T + raw["bq"]
    k = x @ raw["wk"].T + raw["bk"]
    v = x @ raw["wv"].T + raw["bv"]

    def split_heads(t):  # (B, S, E) -> (B, H, S, D)
        return t.reshape(B, S, H, D).transpose(0, 2, 1, 3)

    qh, kh, vh = split_heads(q), split_heads(k), split_heads(v)
    w = jnp.einsum("bhqd,bhkd->bhqk", qh, kh) * SCALING
    attn = jax.nn.softmax(w, axis=-1)
    ctx = jnp.einsum("bhqk,bhkd->bhqd", attn, vh)
    ctx = ctx.transpose(0, 2, 1, 3).reshape(B, S, E)
    return ctx @ raw["wo"].T + raw["bo"]


if __name__ == "__main__":
    root = jax.random.PRNGKey(0)
    kx, kq, kk, kv, ko = jax.random.split(root, 5)

    x = jax.random.normal(kx, (BATCH, SEQ, EMB_DIM), jnp.float32)

    wq, bq = _init_linear(kq, EMB_DIM, EMB_DIM)
    wk, bk = _init_linear(kk, EMB_DIM, EMB_DIM)
    wv, bv = _init_linear(kv, EMB_DIM, EMB_DIM)
    wo, bo = _init_linear(ko, EMB_DIM, EMB_DIM)

    params = prepare_params(wq, bq, wk, bk, wv, bv, wo, bo)

    out = multi_head_attention(x, params)
    out = jax.block_until_ready(out)

    ref = _reference_mha(
        x, dict(wq=wq, bq=bq, wk=wk, bk=bk, wv=wv, bv=bv, wo=wo, bo=bo))

    assert out.shape == (BATCH, SEQ, EMB_DIM)
    # Tolerance covers the EUP approximate reciprocal used for the softmax
    # normalization (and default MXU precision); structural errors would be >> this.
    assert jnp.allclose(out, ref, atol=1e-2, rtol=1e-2), "mismatch vs reference"

    print("KERNEL_OK")
</pallas_src>

<mosaic_0001>
module attributes {stable_mosaic.version = 11 : i64} {
  func.func @_mha_kernel(%arg0: memref<2x8x32xf32, #tpu.memory_space<vmem>>, %arg1: memref<8x32x24xf32, #tpu.memory_space<vmem>>, %arg2: memref<8x1x24xf32, #tpu.memory_space<vmem>>, %arg3: memref<8x8x32xf32, #tpu.memory_space<vmem>>, %arg4: memref<1x32xf32, #tpu.memory_space<vmem>>, %arg5: memref<2x8x32xf32, #tpu.memory_space<vmem>>) attributes {dimension_semantics = [], scalar_prefetch = 0 : i64, scratch_operands = 0 : i64, tpu.core_type = #tpu.core_type<tc>} {
    %c0 = arith.constant 0 : index
    %c0_0 = arith.constant 0 : index
    %c0_1 = arith.constant 0 : index
    %0 = vector.load %arg0[%c0, %c0_0, %c0_1] : memref<2x8x32xf32, #tpu.memory_space<vmem>>, vector<2x8x32xf32>
    %1 = tpu.concatenate %0, %0, %0, %0 in 0 : vector<2x8x32xf32>, vector<2x8x32xf32>, vector<2x8x32xf32>, vector<2x8x32xf32> -> vector<8x8x32xf32>
    %c0_2 = arith.constant 0 : index
    %c0_3 = arith.constant 0 : index
    %c0_4 = arith.constant 0 : index
    %2 = vector.load %arg1[%c0_2, %c0_3, %c0_4] : memref<8x32x24xf32, #tpu.memory_space<vmem>>, vector<8x32x24xf32>
    "tpu.trace_start"() <{level = 10 : i32, message = "nse,nef->nsf"}> : () -> ()
    %cst = arith.constant dense<0.000000e+00> : vector<8x8x24xf32>
    %3 = tpu.matmul %1, %2, %cst {dimension_numbers = #tpu.dot_dimension_numbers<[2], [1], [1], [2], [0, 0, 0, 1, 1, 2], [0], [0]>} : vector<8x8x32xf32>, vector<8x32x24xf32>, vector<8x8x24xf32> -> vector<8x8x24xf32>
    "tpu.trace_stop"() : () -> ()
    %c0_5 = arith.constant 0 : index
    %c0_6 = arith.constant 0 : index
    %c0_7 = arith.constant 0 : index
    %4 = vector.load %arg2[%c0_5, %c0_6, %c0_7] : memref<8x1x24xf32, #tpu.memory_space<vmem>>, vector<8x1x24xf32>
    %5 = vector.broadcast %4 : vector<8x1x24xf32> to vector<8x8x24xf32>
    %6 = arith.addf %3, %5 : vector<8x8x24xf32>
    %7 = vector.extract_strided_slice %6 {offsets = [0, 0, 0], sizes = [8, 8, 8], strides = [1, 1, 1]} : vector<8x8x24xf32> to vector<8x8x8xf32>
    %8 = vector.extract_strided_slice %6 {offsets = [0, 0, 8], sizes = [8, 8, 8], strides = [1, 1, 1]} : vector<8x8x24xf32> to vector<8x8x8xf32>
    %9 = vector.extract_strided_slice %6 {offsets = [0, 0, 16], sizes = [8, 8, 8], strides = [1, 1, 1]} : vector<8x8x24xf32> to vector<8x8x8xf32>
    "tpu.trace_start"() <{level = 10 : i32, message = "nqd,nkd->nqk"}> : () -> ()
    %cst_8 = arith.constant dense<0.000000e+00> : vector<8x8x8xf32>
    %10 = tpu.matmul %7, %8, %cst_8 {dimension_numbers = #tpu.dot_dimension_numbers<[2], [2], [1], [1], [0, 0, 0, 1, 1, 1], [0], [0]>} : vector<8x8x8xf32>, vector<8x8x8xf32>, vector<8x8x8xf32> -> vector<8x8x8xf32>
    "tpu.trace_stop"() : () -> ()
    %cst_9 = arith.constant dense<0xFF800000> : vector<8x8xf32>
    %11 = vector.multi_reduction <maximumf>, %10, %cst_9 [2] : vector<8x8x8xf32> to vector<8x8xf32>
    %12 = vector.shape_cast %11 : vector<8x8xf32> to vector<8x8x1xf32>
    %13 = vector.broadcast %12 : vector<8x8x1xf32> to vector<8x8x8xf32>
    %14 = arith.subf %10, %13 : vector<8x8x8xf32>
    %15 = math.exp %14 : vector<8x8x8xf32>
    %cst_10 = arith.constant dense<0.000000e+00> : vector<8x8xf32>
    %16 = vector.multi_reduction <add>, %15, %cst_10 [2] : vector<8x8x8xf32> to vector<8x8xf32>
    %17 = vector.shape_cast %16 : vector<8x8xf32> to vector<8x8x1xf32>
    %18 = tpu.reciprocal %17 {approx = true} : vector<8x8x1xf32> -> vector<8x8x1xf32>
    %19 = vector.broadcast %18 : vector<8x8x1xf32> to vector<8x8x8xf32>
    %20 = arith.mulf %15, %19 : vector<8x8x8xf32>
    "tpu.trace_start"() <{level = 10 : i32, message = "nqk,nkd->nqd"}> : () -> ()
    %cst_11 = arith.constant dense<0.000000e+00> : vector<8x8x8xf32>
    %21 = tpu.matmul %20, %9, %cst_11 {dimension_numbers = #tpu.dot_dimension_numbers<[2], [1], [1], [2], [0, 0, 0, 1, 1, 2], [0], [0]>} : vector<8x8x8xf32>, vector<8x8x8xf32>, vector<8x8x8xf32> -> vector<8x8x8xf32>
    "tpu.trace_stop"() : () -> ()
    %c0_12 = arith.constant 0 : index
    %c0_13 = arith.constant 0 : index
    %c0_14 = arith.constant 0 : index
    %22 = vector.load %arg3[%c0_12, %c0_13, %c0_14] : memref<8x8x32xf32, #tpu.memory_space<vmem>>, vector<8x8x32xf32>
    "tpu.trace_start"() <{level = 10 : i32, message = "nqd,nde->nqe"}> : () -> ()
    %cst_15 = arith.constant dense<0.000000e+00> : vector<8x8x32xf32>
    %23 = tpu.matmul %21, %22, %cst_15 {dimension_numbers = #tpu.dot_dimension_numbers<[2], [1], [1], [2], [0, 0, 0, 1, 1, 2], [0], [0]>} : vector<8x8x8xf32>, vector<8x8x32xf32>, vector<8x8x32xf32> -> vector<8x8x32xf32>
    "tpu.trace_stop"() : () -> ()
    %24 = vector.extract_strided_slice %23 {offsets = [0, 0, 0], sizes = [2, 8, 32], strides = [1, 1, 1]} : vector<8x8x32xf32> to vector<2x8x32xf32>
    %25 = vector.extract_strided_slice %23 {offsets = [2, 0, 0], sizes = [2, 8, 32], strides = [1, 1, 1]} : vector<8x8x32xf32> to vector<2x8x32xf32>
    %26 = arith.addf %24, %25 : vector<2x8x32xf32>
    %27 = vector.extract_strided_slice %23 {offsets = [4, 0, 0], sizes = [2, 8, 32], strides = [1, 1, 1]} : vector<8x8x32xf32> to vector<2x8x32xf32>
    %28 = arith.addf %26, %27 : vector<2x8x32xf32>
    %29 = vector.extract_strided_slice %23 {offsets = [6, 0, 0], sizes = [2, 8, 32], strides = [1, 1, 1]} : vector<8x8x32xf32> to vector<2x8x32xf32>
    %30 = arith.addf %28, %29 : vector<2x8x32xf32>
    %c0_16 = arith.constant 0 : index
    %c0_17 = arith.constant 0 : index
    %31 = vector.load %arg4[%c0_16, %c0_17] : memref<1x32xf32, #tpu.memory_space<vmem>>, vector<1x32xf32>
    %32 = vector.shape_cast %31 : vector<1x32xf32> to vector<32xf32>
    %33 = vector.shape_cast %32 : vector<32xf32> to vector<1x1x32xf32>
    %34 = vector.broadcast %33 : vector<1x1x32xf32> to vector<2x8x32xf32>
    %35 = arith.addf %30, %34 : vector<2x8x32xf32>
    %c0_18 = arith.constant 0 : index
    %c0_19 = arith.constant 0 : index
    %c0_20 = arith.constant 0 : index
    %36 = vector.load %arg5[%c0_18, %c0_19, %c0_20] : memref<2x8x32xf32, #tpu.memory_space<vmem>>, vector<2x8x32xf32>
    tpu.vector_store %arg5[%c0_18, %c0_19, %c0_20], %35 {strides = array<i32>} : memref<2x8x32xf32, #tpu.memory_space<vmem>>, vector<2x8x32xf32>,
    return
  }
}

</mosaic_0001>

<bundles_post_ra>
// kernel: tpu_custom_call.1
= control target key start
LH: loop header
LB: loop body
LE: loop exit
PB: predicated region body
PF: predicated region fallthrough
CT: control target
= control target key end

     0   :  { %v3073_v3 = vmov 0.0|0.0   ;;  %vm3074_vm0 = vmmov 0   ;;  %v3075_v11 = vmov 0.0   ;;  %vm111_vm1 = vcmask 261120   ;;  %s3514_s0 = inlined_call_operand.vmem [shape: f32[2,8,32], index: 0, kind: input, shape index: {}]   ;;  %s3515_s1 = inlined_call_operand.vmem [shape: f32[8,32,24], index: 1, kind: input, shape index: {}]   ;;  %s3516_s2 = inlined_call_operand.vmem [shape: f32[8,1,24], index: 2, kind: input, shape index: {}]   ;;  %s3517_s3 = inlined_call_operand.vmem [shape: f32[8,8,32], index: 3, kind: input, shape index: {}]   ;;  %s3518_s4 = inlined_call_operand.vmem [shape: f32[1,32], index: 4, kind: input, shape index: {}]   ;;  %s3519_s5 = inlined_call_operand.hbm [shape: f32[2,8,32], index: 5, kind: output, shape index: {}]  }
   0x1   :  { %v23_v0 = vld [vmem:[%s3515_s1] sm:$0xff]  ;;  %v24_v1 = vld [vmem:[%s3515_s1 + $0x8] sm:$0xff]  ;;  %2961 = vmatprep.subr.bf16.mxu0 %v3073_v3  ;;  %2967 = vmatprep.subr.bf16.mxu1 %v3073_v3  ;;  %v25_v6 = vld [vmem:[%s3515_s1 + $0x10] sm:$0xff] }
   0x2   :  { %v27_v2 = vld [vmem:[%s3515_s1 + $0x20] sm:$0xff]  ;;  %v2962_v4 = vpack.c.bf16 %v24_v1, %v23_v0  ;;  %v28_v5 = vld [vmem:[%s3515_s1 + $0x28] sm:$0xff]  ;;  %v26_v7 = vld [vmem:[%s3515_s1 + $0x18] sm:$0xff]  ;;  %2761 = vmatprep.mubr.msk.f32.mxu0 %vm3074_vm0, %v3075_v11  ;;  %2772 = vmatprep.mubr.msk.f32.mxu1 %vm3074_vm0, %v3075_v11 }
   0x3   :  { %v2968_v8 = vpack.c.bf16 %v28_v5, %v27_v2  ;;  %v29_v9 = vld [vmem:[%s3515_s1 + $0x30] sm:$0xff]  ;;  %v30_v10 = vld [vmem:[%s3515_s1 + $0x38] sm:$0xff]  ;;  %v2965_v12 = vpack.c.bf16 %v26_v7, %v25_v6  ;;  %v31_v14 = vld [vmem:[%s3515_s1 + $0x40] sm:$0xff] }
   0x4   :  { %2963 = vmatpush3.bf16.msra.mxu0 %v2962_v4  ;;  %v2971_v13 = vpack.c.bf16 %v30_v10, %v29_v9  ;;  %v32_v15 = vld [vmem:[%s3515_s1 + $0x48] sm:$0xff]  ;;  %v35_v16 = vld [vmem:[%s3515_s1 + $0x60] sm:$0xff]  ;;  %v33_v22 = vld [vmem:[%s3515_s1 + $0x50] sm:$0xff] }
   0x5   :  { %2969 = vmatpush3.bf16.msra.mxu1 %v2968_v8  ;;  %2964 = vmatprep.subr.bf16.mxu0 %v3073_v3  ;;  %v36_v17 = vld [vmem:[%s3515_s1 + $0x68] sm:$0xff]  ;;  %v3158_v18 = vld [vmem:[%s3514_s0] sm:$0xff]  ;;  %v2974_v19 = vpack.c.bf16 %v32_v15, %v31_v14  ;;  %v34_v23 = vld [vmem:[%s3515_s1 + $0x58] sm:$0xff] }
   0x6   :  { %2970 = vmatprep.subr.bf16.mxu1 %v3073_v3  ;;  %v3163_v20 = vld [vmem:[%s3514_s0 + $0x8] sm:$0xff]  ;;  %v2980_v21 = vpack.c.bf16 %v36_v17, %v35_v16  ;;  %v37_v24 = vld [vmem:[%s3515_s1 + $0x70] sm:$0xff]  ;;  %v38_v25 = vld [vmem:[%s3515_s1 + $0x78] sm:$0xff]  ;;  %v2977_v26 = vpack.c.bf16 %v34_v23, %v33_v22 }
   0x8   :  { %2966 = vmatpush3.bf16.msra.mxu0 %v2965_v12 }
   0x9   :  { %2972 = vmatpush3.bf16.msra.mxu1 %v2971_v13  ;;  %2973 = vmatprep.subr.bf16.mxu0 %v3073_v3 }
   0xa   :  { %2979 = vmatprep.subr.bf16.mxu1 %v3073_v3 }
   0xb   :  { %2762 = vmatmul.mubr.msk.f32.vlgmr.msra.gmra.mrb[0].mxu0 %vm111_vm1, %v3158_v18 }
   0xc   :  { %2773 = vmatmul.mubr.msk.f32.vlgmr.msra.gmra.mrb[0].mxu1 %vm111_vm1, %v3163_v20  ;;  %2975 = vmatpush3.bf16.msra.mxu0 %v2974_v19 }
   0xd   :  { %10 = vsyncpa [#allocation3], 0  ;;  %2981 = vmatpush3.bf16.msra.mxu1 %v2980_v21  ;;  %2976 = vmatprep.subr.bf16.mxu0 %v3073_v3  ;;  %v2983_v27 = vpack.c.bf16 %v38_v25, %v37_v24  ;;  %v39_v28 = vld [vmem:[%s3515_s1 + $0x80] sm:$0xff]  ;;  %v40_v29 = vld [vmem:[%s3515_s1 + $0x88] sm:$0xff]  ;;  %s3076_s12 = smov 120   ;;  %vm681_vm2 = vcmask 64512  }
   0xe   :  { %2982 = vmatprep.subr.bf16.mxu1 %v3073_v3  ;;  %2783 = vmatprep.mubr.msk.f32.mxu0 %vm3074_vm0, %v3075_v11  ;;  %v43_v30 = vld [vmem:[%s3515_s1 + $0xa0] sm:$0xff]  ;;  %v44_v31 = vld [vmem:[%s3515_s1 + $0xa8] sm:$0xff]  ;;  %v2986_v32 = vpack.c.bf16 %v40_v29, %v39_v28  ;;  %v41_v34 = vld [vmem:[%s3515_s1 + $0x90] sm:$0xff]  ;;  %s3078_s15 = smov [#allocation2]  }
   0xf   :  { %2794 = vmatprep.mubr.msk.f32.mxu1 %vm3074_vm0, %v3075_v11  ;;  %v2992_v33 = vpack.c.bf16 %v44_v31, %v43_v30  ;;  %v42_v35 = vld [vmem:[%s3515_s1 + $0x98] sm:$0xff]  ;;  %v45_v36 = vld [vmem:[%s3515_s1 + $0xb0] sm:$0xff]  ;;  %v47_v40 = vld [vmem:[%s3515_s1 + $0xc0] sm:$0xff]  ;;  %s2605_s16 = sshll.u32 %s3078_s15, 4  ;;  %s2606_s16 = int_to_ptr.vmem [resolvable:$true] %s2605_s16 }
  0x10   :  { %2978 = vmatpush3.bf16.msra.mxu0 %v2977_v26  ;;  %v46_v37 = vld [vmem:[%s3515_s1 + $0xb8] sm:$0xff]  ;;  %v2989_v38 = vpack.c.bf16 %v42_v35, %v41_v34  ;;  %v48_v41 = vld [vmem:[%s3515_s1 + $0xc8] sm:$0xff]  ;;  %v51_v42 = vld [vmem:[%s3515_s1 + $0xe0] sm:$0xff]  ;;  %s3049_s17 = scalar_lea.vmem %s2606_s16, 256  ;;  %p3054_p1 = scmp.lt.s32.totalorder %s2606_s16, %s2606_s16 }
  0x11   :  { %2984 = vmatpush3.bf16.msra.mxu1 %v2983_v27  ;;  %2985 = vmatprep.subr.bf16.mxu0 %v3073_v3  ;;  %v2995_v39 = vpack.c.bf16 %v46_v37, %v45_v36  ;;  %v52_v43 = vld [vmem:[%s3515_s1 + $0xe8] sm:$0xff]  ;;  %v2998_v44 = vpack.c.bf16 %v48_v41, %v47_v40  ;;  %v49_v46 = vld [vmem:[%s3515_s1 + $0xd0] sm:$0xff]  ;;  %v50_v47 = vld [vmem:[%s3515_s1 + $0xd8] sm:$0xff]  ;;  %p3050_p0 = scmp.ne.s32.totalorder %s2606_s16, %s3049_s17  ;;  %p3055_p2 = scmp.lt.s32.totalorder %s3049_s17, %s3049_s17 }
  0x12   :  { %2991 = vmatprep.subr.bf16.mxu1 %v3073_v3  ;;  %v3004_v45 = vpack.c.bf16 %v52_v43, %v51_v42  ;;  %v53_v48 = vld [vmem:[%s3515_s1 + $0xf0] sm:$0xff]  ;;  %v54_v49 = vld [vmem:[%s3515_s1 + $0xf8] sm:$0xff]  ;;  %v3001_v50 = vpack.c.bf16 %v50_v47, %v49_v46  ;;  %v2616_v52 = vld [vmem:[%s3516_s2] ss:$0 sm:$0xff] }
  0x13   :  { %2784 = vmatmul.mubr.msk.f32.vlgmr.msra.gmra.mrb[2].mxu0 %vm111_vm1, %v3158_v18  ;;  %v3007_v51 = vpack.c.bf16 %v54_v49, %v53_v48  ;;  %v2617_v57 = vld [vmem:[%s3516_s2 + $0x1] ss:$0 sm:$0xff]  ;;  %v2618_v60 = vld [vmem:[%s3516_s2 + $0x2] ss:$0 sm:$0xff]  ;;  %v2619_v1 = vld [vmem:[%s3516_s2 + $0x3] ss:$0 sm:$0xff]  ;;  %p3056_p3 = por %p3055_p2, %p3054_p1 }
  0x14   :  { %2795 = vmatmul.mubr.msk.f32.vlgmr.msra.gmra.mrb[2].mxu1 %vm111_vm1, %v3163_v20  ;;  %2987 = vmatpush3.bf16.msra.mxu0 %v2986_v32  ;;  %v2620_v4 = vld [vmem:[%s3516_s2 + $0x4] ss:$0 sm:$0xff]  ;;  %v2621_v5 = vld [vmem:[%s3516_s2 + $0x5] ss:$0 sm:$0xff]  ;;  %v2622_v13 = vld [vmem:[%s3516_s2 + $0x6] ss:$0 sm:$0xff] }
  0x15   :  { %2993 = vmatpush3.bf16.msra.mxu1 %v2992_v33  ;;  %2988 = vmatprep.subr.bf16.mxu0 %v3073_v3  ;;  %v2623_v14 = vld [vmem:[%s3516_s2 + $0x7] ss:$0 sm:$0xff]  ;;  %s3077_s2 = smov 112   ;;  %p3057_p4 = pnand %p3056_p3, %p3050_p0 }
  0x16   :  { %2994 = vmatprep.subr.bf16.mxu1 %v3073_v3  ;;  %2805 = vmatprep.mubr.msk.f32.mxu0 %vm3074_vm0, %v3075_v11 }
  0x17   :  { %2816 = vmatprep.mubr.msk.f32.mxu1 %vm3074_vm0, %v3075_v11 }
  0x18   :  { %2990 = vmatpush3.bf16.msra.mxu0 %v2989_v38 }
  0x19   :  { %2996 = vmatpush3.bf16.msra.mxu1 %v2995_v39  ;;  %2997 = vmatprep.subr.bf16.mxu0 %v3073_v3 }
  0x1a   :  { %3003 = vmatprep.subr.bf16.mxu1 %v3073_v3 }
  0x1b   :  { %2806 = vmatmul.mubr.msk.f32.vlgmr.msra.gmra.mrb[4].mxu0 %vm111_vm1, %v3158_v18 }
  0x1c   :  { %2817 = vmatmul.mubr.msk.f32.vlgmr.msra.gmra.mrb[4].mxu1 %vm111_vm1, %v3163_v20  ;;  %2999 = vmatpush3.bf16.msra.mxu0 %v2998_v44 }
  0x1d   :  { %3005 = vmatpush3.bf16.msra.mxu1 %v3004_v45  ;;  %3000 = vmatprep.subr.bf16.mxu0 %v3073_v3 }
  0x1e   :  { %3006 = vmatprep.subr.bf16.mxu1 %v3073_v3  ;;  %2827 = vmatprep.mubr.msk.f32.mxu0 %vm3074_vm0, %v3075_v11 }
  0x1f   :  { %2838 = vmatprep.mubr.msk.f32.mxu1 %vm3074_vm0, %v3075_v11 }
  0x20   :  { %3002 = vmatpush3.bf16.msra.mxu0 %v3001_v50 }
  0x21   :  { %3008 = vmatpush3.bf16.msra.mxu1 %v3007_v51  ;;  %2841 = vmatprep.subr.mxu0 %v3075_v11 }
  0x22   :  { %2846 = vmatprep.subr.mxu1 %v3075_v11 }
  0x23   :  { %2828 = vmatmul.mubr.msk.f32.vlgmr.msra.gmra.mrb[6].mxu0 %vm111_vm1, %v3158_v18 }
  0x24   :  { %2839 = vmatmul.mubr.msk.f32.vlgmr.msra.gmra.mrb[6].mxu1 %vm111_vm1, %v3163_v20  ;;  %2843 = vmatprep.mubr.msk.f32.mxu0 %vm3074_vm0, %v3075_v11 }
  0x25   :  { %2848 = vmatprep.mubr.msk.f32.mxu1 %vm3074_vm0, %v3075_v11 }
  0xde   :  { %v181_v53 = vpop.f32.mrb[0].mxu0 }
  0xdf   :  { %v3274_v54 = vadd.f32 %v2616_v52, %v181_v53  ;;  %v254_v55 = vpop.f32.mrb[0].mxu1  ;;  %v2763_v56 = vpop.f32.mrb[1].mxu0 }
  0xe0   :  { %v2774_v58 = vpop.f32.mrb[1].mxu1  ;;  %v3281_v59 = vadd.f32 %v2617_v57, %v254_v55 }
  0xe1   :  { %679 = vrot.lane.b32.xlu0 %v3274_v54, %s3076_s12 }
  0xe5   :  { %757 = vrot.lane.b32.xlu0 %v3281_v59, %s3076_s12 }
  0xe6   :  { %v324_v61 = vpop.f32.mrb[2].mxu0 }
  0xe7   :  { %v3288_v62 = vadd.f32 %v2618_v60, %v324_v61  ;;  %v394_v63 = vpop.f32.mrb[2].mxu1  ;;  %v2785_v0 = vpop.f32.mrb[3].mxu0 }
  0xe8   :  { %v2796_v2 = vpop.f32.mrb[3].mxu1  ;;  %v3295_v3 = vadd.f32 %v2619_v1, %v394_v63 }
  0xe9   :  { %834 = vrot.lane.b32.xlu1 %v3288_v62, %s3076_s12 }
  0xed   :  { %911 = vrot.lane.b32.xlu1 %v3295_v3, %s3076_s12 }
  0xee   :  { %v464_v6 = vpop.f32.mrb[4].mxu0 }
  0xef   :  { %v3305_v7 = vadd.f32 %v2620_v4, %v464_v6  ;;  %v534_v8 = vpop.f32.mrb[4].mxu1  ;;  %v2807_v9 = vpop.f32.mrb[5].mxu0 }
  0xf0   :  { %v3307_v10 = vadd.f32 %v2621_v5, %v534_v8  ;;  %v2818_v12 = vpop.f32.mrb[5].mxu1 }
  0xf1   :  { %988 = vrot.lane.b32.xlu0 %v3305_v7, %s3076_s12 }
  0xf2   :  { %1065 = vrot.lane.b32.xlu1 %v3307_v10, %s3076_s12 }
  0xf6   :  { %v604_v15 = vpop.f32.mrb[6].mxu0 }
  0xf7   :  { %v3319_v16 = vadd.f32 %v2622_v13, %v604_v15  ;;  %v674_v17 = vpop.f32.mrb[6].mxu1  ;;  %v2829_v18 = vpop.f32.mrb[7].mxu0 }
  0xf8   :  { %v3321_v19 = vadd.f32 %v2623_v14, %v674_v17  ;;  %v2840_v20 = vpop.f32.mrb[7].mxu1 }
  0xf9   :  { %1142 = vrot.lane.b32.xlu0 %v3319_v16, %s3076_s12 }
  0xfa   :  { %1219 = vrot.lane.b32.xlu1 %v3321_v19, %s3076_s12 }
 0x153   :  { %v680_v21 = vpop.permute.xlu0 %679 }
 0x154   :  { %2842 = vmatpush3.xpose.msk.msra.mxu0 %vm681_vm2, %v680_v21 }
 0x155   :  { %2851 = vmatprep.subr.mxu0 %v3075_v11 }
 0x157   :  { %2844 = vmatmul.mubr.msk.f32.vlgmr.msra.gmra.mrb[8].mxu0 %vm681_vm2, %v3274_v54  ;;  %v758_v22 = vpop.permute.xlu0 %757 }
 0x158   :  { %2847 = vmatpush3.xpose.msk.msra.mxu1 %vm681_vm2, %v758_v22  ;;  %2853 = vmatprep.mubr.msk.f32.mxu0 %vm3074_vm0, %v3075_v11 }
 0x159   :  { %2856 = vmatprep.subr.mxu1 %v3075_v11 }
 0x15b   :  { %2849 = vmatmul.mubr.msk.f32.vlgmr.msra.gmra.mrb[8].mxu1 %vm681_vm2, %v3281_v59  ;;  %v835_v23 = vpop.permute.xlu1 %834 }
 0x15c   :  { %2852 = vmatpush3.xpose.msk.msra.mxu0 %vm681_vm2, %v835_v23  ;;  %2858 = vmatprep.mubr.msk.f32.mxu1 %vm3074_vm0, %v3075_v11 }
 0x15d   :  { %2861 = vmatprep.subr.mxu0 %v3075_v11 }
 0x15f   :  { %2854 = vmatmul.mubr.msk.f32.vlgmr.msra.gmra.mrb[10].mxu0 %vm681_vm2, %v3288_v62  ;;  %v912_v24 = vpop.permute.xlu1 %911 }
 0x160   :  { %2857 = vmatpush3.xpose.msk.msra.mxu1 %vm681_vm2, %v912_v24  ;;  %2863 = vmatprep.mubr.msk.f32.mxu0 %vm3074_vm0, %v3075_v11 }
 0x161   :  { %2866 = vmatprep.subr.mxu1 %v3075_v11 }
 0x163   :  { %2859 = vmatmul.mubr.msk.f32.vlgmr.msra.gmra.mrb[10].mxu1 %vm681_vm2, %v3295_v3  ;;  %v989_v25 = vpop.permute.xlu0 %988 }
 0x164   :  { %v1066_v26 = vpop.permute.xlu1 %1065  ;;  %2862 = vmatpush3.xpose.msk.msra.mxu0 %vm681_vm2, %v989_v25  ;;  %2868 = vmatprep.mubr.msk.f32.mxu1 %vm3074_vm0, %v3075_v11 }
 0x165   :  { %2867 = vmatpush3.xpose.msk.msra.mxu1 %vm681_vm2, %v1066_v26  ;;  %2871 = vmatprep.subr.mxu0 %v3075_v11 }
 0x166   :  { %2876 = vmatprep.subr.mxu1 %v3075_v11 }
 0x167   :  { %2864 = vmatmul.mubr.msk.f32.vlgmr.msra.gmra.mrb[12].mxu0 %vm681_vm2, %v3305_v7 }
 0x168   :  { %2869 = vmatmul.mubr.msk.f32.vlgmr.msra.gmra.mrb[12].mxu1 %vm681_vm2, %v3307_v10  ;;  %2873 = vmatprep.mubr.msk.f32.mxu0 %vm3074_vm0, %v3075_v11 }
 0x169   :  { %2878 = vmatprep.mubr.msk.f32.mxu1 %vm3074_vm0, %v3075_v11 }
 0x16b   :  { %v1143_v27 = vpop.permute.xlu0 %1142 }
 0x16c   :  { %v1220_v28 = vpop.permute.xlu1 %1219  ;;  %2872 = vmatpush3.xpose.msk.msra.mxu0 %vm681_vm2, %v1143_v27 }
 0x16d   :  { %2877 = vmatpush3.xpose.msk.msra.mxu1 %vm681_vm2, %v1220_v28  ;;  %2881 = vmatprep.subr.mxu0 %v3075_v11 }
 0x16e   :  { %2886 = vmatprep.subr.mxu1 %v3075_v11 }
 0x16f   :  { %2874 = vmatmul.mubr.msk.f32.vlgmr.msra.gmra.mrb[14].mxu0 %vm681_vm2, %v3319_v16 }
 0x170   :  { %2879 = vmatmul.mubr.msk.f32.vlgmr.msra.gmra.mrb[14].mxu1 %vm681_vm2, %v3321_v19  ;;  %2883 = vmatprep.mubr.msk.f32.mxu0 %vm3074_vm0, %v3075_v11 }
 0x171   :  { %2888 = vmatprep.mubr.msk.f32.mxu1 %vm3074_vm0, %v3075_v11 }
 0x22a   :  { %v752_v29 = vpop.f32.mrb[8].mxu0 }
 0x22b   :  { %v2845_v30 = vpop.f32.mrb[9].mxu0  ;;  %v1295_v31 = vsel %vm681_vm2, %v752_v29, -inf }
 0x22c   :  { %1296 = vmax.xlane.f32.xlu0 %v1295_v31 }
 0x22e   :  { %v829_v32 = vpop.f32.mrb[8].mxu1 }
 0x22f   :  { %v2850_v33 = vpop.f32.mrb[9].mxu1  ;;  %v1298_v34 = vsel %vm681_vm2, %v829_v32, -inf }
 0x230   :  { %1299 = vmax.xlane.f32.xlu1 %v1298_v34 }
 0x232   :  { %v906_v35 = vpop.f32.mrb[10].mxu0 }
 0x233   :  { %v2855_v36 = vpop.f32.mrb[11].mxu0  ;;  %v1301_v37 = vsel %vm681_vm2, %v906_v35, -inf }
 0x234   :  { %1302 = vmax.xlane.f32.xlu0 %v1301_v37 }
 0x236   :  { %v983_v38 = vpop.f32.mrb[10].mxu1 }
 0x237   :  { %v2860_v39 = vpop.f32.mrb[11].mxu1  ;;  %v1304_v40 = vsel %vm681_vm2, %v983_v38, -inf }
 0x238   :  { %1305 = vmax.xlane.f32.xlu0 %v1304_v40 }
 0x23a   :  { %v1060_v41 = vpop.f32.mrb[12].mxu0 }
 0x23b   :  { %v1137_v42 = vpop.f32.mrb[12].mxu1  ;;  %v2865_v43 = vpop.f32.mrb[13].mxu0  ;;  %v1307_v44 = vsel %vm681_vm2, %v1060_v41, -inf }
 0x23c   :  { %v2870_v45 = vpop.f32.mrb[13].mxu1  ;;  %v1310_v46 = vsel %vm681_vm2, %v1137_v42, -inf  ;;  %1308 = vmax.xlane.f32.xlu1 %v1307_v44 }
 0x23d   :  { %1311 = vmax.xlane.f32.xlu0 %v1310_v46 }
 0x242   :  { %v1214_v47 = vpop.f32.mrb[14].mxu0 }
 0x243   :  { %v1291_v48 = vpop.f32.mrb[14].mxu1  ;;  %v2875_v49 = vpop.f32.mrb[15].mxu0  ;;  %v1313_v50 = vsel %vm681_vm2, %v1214_v47, -inf }
 0x244   :  { %v2880_v51 = vpop.f32.mrb[15].mxu1  ;;  %v1316_v52 = vsel %vm681_vm2, %v1291_v48, -inf  ;;  %1314 = vmax.xlane.f32.xlu1 %v1313_v50 }
 0x245   :  { %1317 = vmax.xlane.f32.xlu0 %v1316_v52 }
 0x255   :  { %1383 = vrot.lane.b32.xlu1 %v3274_v54, %s3077_s2 }
 0x259   :  { %1535 = vrot.lane.b32.xlu1 %v3288_v62, %s3077_s2 }
 0x25b   :  { %1459 = vrot.lane.b32.xlu0 %v3281_v59, %s3077_s2 }
 0x25d   :  { %1611 = vrot.lane.b32.xlu1 %v3295_v3, %s3077_s2 }
 0x25f   :  { %1687 = vrot.lane.b32.xlu0 %v3305_v7, %s3077_s2 }
 0x261   :  { %1763 = vrot.lane.b32.xlu1 %v3307_v10, %s3077_s2 }
 0x2b9   :  { %v1297_v53 = vpop.xlane.xlu0 %1296 }
 0x2ba   :  { %v1319_v55 = vsub.f32 %v752_v29, %v1297_v53 }
 0x2bc   :  { %v1327_v56 = vmul.f32 1.442695, %v1319_v55 }
 0x2bd   :  { %v1300_v57 = vpop.xlane.xlu1 %1299 }
 0x2be   :  { %3017 = vpow2.f32 %v1327_v56  ;;  %v1320_v54 = vsub.f32 %v829_v32, %v1300_v57 }
 0x2c0   :  { %v1329_v58 = vmul.f32 1.442695, %v1320_v54 }
 0x2c1   :  { %v1303_v60 = vpop.xlane.xlu0 %1302 }
 0x2c2   :  { %3019 = vpow2.f32 %v1329_v58  ;;  %v1321_v61 = vsub.f32 %v906_v35, %v1303_v60 }
 0x2c4   :  { %v1331_v59 = vmul.f32 1.442695, %v1321_v61 }
 0x2c5   :  { %v1306_v62 = vpop.xlane.xlu0 %1305 }
 0x2c6   :  { %3021 = vpow2.f32 %v1331_v59  ;;  %v1322_v63 = vsub.f32 %v983_v38, %v1306_v62  ;;  %v1991_v62 = vld [vmem:[%s3517_s3] sm:$0xff] }
 0x2c8   :  { %v3018_v0 = vpop.eup %3017  ;;  %v1333_v1 = vmul.f32 1.442695, %v1322_v63  ;;  %v1992_v63 = vld [vmem:[%s3517_s3 + $0x8] sm:$0xff] }
 0x2c9   :  { %v1309_v2 = vpop.xlane.xlu1 %1308  ;;  %v1343_v3 = vsel %vm681_vm2, %v3018_v0, 0.0 }
 0x2ca   :  { %3023 = vpow2.f32 %v1333_v1  ;;  %v1312_v4 = vpop.xlane.xlu0 %1311  ;;  %v1323_v5 = vsub.f32 %v1060_v41, %v1309_v2  ;;  %1344 = vadd.xlane.f32.xlu1 %v1343_v3  ;;  %v1994_v3 = vld [vmem:[%s3517_s3 + $0x18] sm:$0xff] }
 0x2cb   :  { %v1324_v6 = vsub.f32 %v1137_v42, %v1312_v4 }
 0x2cc   :  { %v3020_v7 = vpop.eup %3019  ;;  %v1335_v8 = vmul.f32 1.442695, %v1323_v5 }
 0x2cd   :  { %v1337_v9 = vmul.f32 1.442695, %v1324_v6  ;;  %v1346_v10 = vsel %vm681_vm2, %v3020_v7, 0.0  ;;  %v1995_v6 = vld [vmem:[%s3517_s3 + $0x20] sm:$0xff] }
 0x2ce   :  { %3025 = vpow2.f32 %v1335_v8  ;;  %1347 = vadd.xlane.f32.xlu0 %v1346_v10 }
 0x2cf   :  { %3027 = vpow2.f32 %v1337_v9  ;;  %v1996_v9 = vld [vmem:[%s3517_s3 + $0x28] sm:$0xff] }
 0x2d0   :  { %v3022_v12 = vpop.eup %3021 }
 0x2d1   :  { %v1315_v13 = vpop.xlane.xlu1 %1314  ;;  %v1349_v14 = vsel %vm681_vm2, %v3022_v12, 0.0 }
 0x2d2   :  { %v1318_v15 = vpop.xlane.xlu0 %1317  ;;  %v1325_v17 = vsub.f32 %v1214_v47, %v1315_v13  ;;  %1350 = vadd.xlane.f32.xlu1 %v1349_v14  ;;  %v1997_v13 = vld [vmem:[%s3517_s3 + $0x30] sm:$0xff] }
 0x2d3   :  { %v1326_v18 = vsub.f32 %v1291_v48, %v1318_v15  ;;  %v1998_v15 = vld [vmem:[%s3517_s3 + $0x38] sm:$0xff] }
 0x2d4   :  { %v3024_v20 = vpop.eup %3023  ;;  %v1339_v21 = vmul.f32 1.442695, %v1325_v17 }
 0x2d5   :  { %v1341_v22 = vmul.f32 1.442695, %v1326_v18  ;;  %v1384_v23 = vpop.permute.xlu1 %1383  ;;  %v1352_v24 = vsel %vm681_vm2, %v3024_v20, 0.0 }
 0x2d6   :  { %3029 = vpow2.f32 %v1339_v21  ;;  %v1460_v25 = vpop.permute.xlu0 %1459  ;;  %1353 = vadd.xlane.f32.xlu0 %v1352_v24  ;;  %2882 = vmatpush3.msra.mxu0 %v1384_v23 }
 0x2d7   :  { %3031 = vpow2.f32 %v1341_v22  ;;  %2887 = vmatpush3.msra.mxu1 %v1460_v25  ;;  %2891 = vmatprep.subr.mxu0 %v3075_v11 }
 0x2d8   :  { %v3026_v26 = vpop.eup %3025  ;;  %2896 = vmatprep.subr.mxu1 %v3075_v11 }
 0x2d9   :  { %v3028_v27 = vpop.eup %3027  ;;  %v1355_v28 = vsel %vm681_vm2, %v3026_v26, 0.0  ;;  %v1536_v34 = vpop.permute.xlu1 %1535 }
 0x2da   :  { %v1358_v29 = vsel %vm681_vm2, %v3028_v27, 0.0  ;;  %1356 = vadd.xlane.f32.xlu1 %v1355_v28  ;;  %v1688_v37 = vpop.permute.xlu0 %1687 }
 0x2db   :  { %1359 = vadd.xlane.f32.xlu0 %v1358_v29 }
 0x2dd   :  { %v1612_v35 = vpop.permute.xlu1 %1611 }
 0x2e0   :  { %v3403_v30 = vpop.eup %3029 }
 0x2e1   :  { %v3405_v31 = vpop.eup %3031  ;;  %v1361_v32 = vsel %vm681_vm2, %v3403_v30, 0.0  ;;  %v1764_v36 = vpop.permute.xlu1 %1763 }
 0x2e2   :  { %v1364_v33 = vsel %vm681_vm2, %v3405_v31, 0.0  ;;  %1362 = vadd.xlane.f32.xlu1 %v1361_v32 }
 0x2e3   :  { %1365 = vadd.xlane.f32.xlu0 %v1364_v33 }
 0x2f3   :  { %1915 = vrot.lane.b32.xlu1 %v3321_v19, %s3077_s2 }
 0x2f9   :  { %1839 = vrot.lane.b32.xlu0 %v3319_v16, %s3077_s2 }
 0x357   :  { %v1345_v38 = vpop.xlane.xlu1 %1344 }
 0x358   :  { %3033 = vrcp.f32 %v1345_v38 }
 0x35b   :  { %v1348_v39 = vpop.xlane.xlu0 %1347 }
 0x35c   :  { %3035 = vrcp.f32 %v1348_v39 }
 0x35f   :  { %v1351_v40 = vpop.xlane.xlu1 %1350 }
 0x360   :  { %3037 = vrcp.f32 %v1351_v40 }
 0x362   :  { %v3034_v41 = vpop.eup %3033 }
 0x363   :  { %v1375_v42 = vmul.f32 %v3034_v41, %v3018_v0  ;;  %v1354_v43 = vpop.xlane.xlu0 %1353  ;;  %v1993_v0 = vld [vmem:[%s3517_s3 + $0x10] sm:$0xff]  ;;  %v2664_v41 = vld [vmem:[%s3518_s4] ss:$0 sm:$0xff] }
 0x364   :  { %3039 = vrcp.f32 %v1354_v43 }
 0x365   :  { %2884 = vmatmul.mubr.msk.f32.vlgmr.msra.gmra.mrb[16].mxu0 %vm681_vm2, %v1375_v42 }
 0x366   :  { %v3036_v19 = vpop.eup %3035  ;;  %2892 = vmatpush3.msra.mxu0 %v1536_v34  ;;  %2893 = vmatprep.mubr.msk.f32.mxu0 %vm3074_vm0, %v3075_v11 }
 0x367   :  { %v1376_v16 = vmul.f32 %v3036_v19, %v3020_v7  ;;  %v1357_v44 = vpop.xlane.xlu1 %1356  ;;  %2901 = vmatprep.subr.mxu0 %v3075_v11 }
 0x368   :  { %v1360_v45 = vpop.xlane.xlu0 %1359  ;;  %3041 = vrcp.f32 %v1357_v44 }
 0x369   :  { %3043 = vrcp.f32 %v1360_v45  ;;  %2889 = vmatmul.mubr.msk.f32.vlgmr.msra.gmra.mrb[16].mxu1 %vm681_vm2, %v1376_v16 }
 0x36a   :  { %v3038_v46 = vpop.eup %3037  ;;  %2897 = vmatpush3.msra.mxu1 %v1612_v35  ;;  %2898 = vmatprep.mubr.msk.f32.mxu1 %vm3074_vm0, %v3075_v11 }
 0x36b   :  { %v1377_v47 = vmul.f32 %v3038_v46, %v3022_v12  ;;  %2906 = vmatprep.subr.mxu1 %v3075_v11 }
 0x36d   :  { %2894 = vmatmul.mubr.msk.f32.vlgmr.msra.gmra.mrb[18].mxu0 %vm681_vm2, %v1377_v47 }
 0x36e   :  { %v3040_v48 = vpop.eup %3039  ;;  %2902 = vmatpush3.msra.mxu0 %v1688_v37  ;;  %2903 = vmatprep.mubr.msk.f32.mxu0 %vm3074_vm0, %v3075_v11 }
 0x36f   :  { %v1378_v49 = vmul.f32 %v3040_v48, %v3024_v20  ;;  %v1363_v50 = vpop.xlane.xlu1 %1362  ;;  %2911 = vmatprep.subr.mxu0 %v3075_v11 }
 0x370   :  { %v1366_v51 = vpop.xlane.xlu0 %1365  ;;  %3045 = vrcp.f32 %v1363_v50 }
 0x371   :  { %3047 = vrcp.f32 %v1366_v51  ;;  %2899 = vmatmul.mubr.msk.f32.vlgmr.msra.gmra.mrb[18].mxu1 %vm681_vm2, %v1378_v49 }
 0x372   :  { %v3042_v52 = vpop.eup %3041  ;;  %2907 = vmatpush3.msra.mxu1 %v1764_v36  ;;  %2908 = vmatprep.mubr.msk.f32.mxu1 %vm3074_vm0, %v3075_v11 }
 0x373   :  { %v3044_v53 = vpop.eup %3043  ;;  %v1379_v55 = vmul.f32 %v3042_v52, %v3026_v26  ;;  %2916 = vmatprep.subr.mxu1 %v3075_v11  ;;  %v1916_v54 = vpop.permute.xlu1 %1915 }
 0x374   :  { %v1380_v56 = vmul.f32 %v3044_v53, %v3028_v27  ;;  %v1840_v57 = vpop.permute.xlu0 %1839 }
 0x375   :  { %2904 = vmatmul.mubr.msk.f32.vlgmr.msra.gmra.mrb[20].mxu0 %vm681_vm2, %v1379_v55 }
 0x376   :  { %2909 = vmatmul.mubr.msk.f32.vlgmr.msra.gmra.mrb[20].mxu1 %vm681_vm2, %v1380_v56  ;;  %2912 = vmatpush3.msra.mxu0 %v1840_v57 }
 0x377   :  { %2917 = vmatpush3.msra.mxu1 %v1916_v54  ;;  %2913 = vmatprep.mubr.msk.f32.mxu0 %vm3074_vm0, %v3075_v11 }
 0x378   :  { %2918 = vmatprep.mubr.msk.f32.mxu1 %vm3074_vm0, %v3075_v11  ;;  %2921 = vmatprep.subr.mxu0 %v3075_v11 }
 0x379   :  { %2926 = vmatprep.subr.mxu1 %v3075_v11 }
 0x37a   :  { %v3046_v58 = vpop.eup %3045 }
 0x37b   :  { %v3048_v60 = vpop.eup %3047  ;;  %v1381_v61 = vmul.f32 %v3046_v58, %v3403_v30 }
 0x37c   :  { %v1382_v59 = vmul.f32 %v3048_v60, %v3405_v31 }
 0x37d   :  { %2914 = vmatmul.mubr.msk.f32.vlgmr.msra.gmra.mrb[22].mxu0 %vm681_vm2, %v1381_v61 }
 0x37e   :  { %2919 = vmatmul.mubr.msk.f32.vlgmr.msra.gmra.mrb[22].mxu1 %vm681_vm2, %v1382_v59  ;;  %2923 = vmatprep.mubr.msk.f32.mxu0 %vm3074_vm0, %v3075_v11 }
 0x37f   :  { %2928 = vmatprep.mubr.msk.f32.mxu1 %vm3074_vm0, %v3075_v11  ;;  %2922 = vmatpush3.msra.mxu0 %v1991_v62 }
 0x380   :  { %2931 = vmatprep.subr.mxu0 %v3075_v11  ;;  %2927 = vmatpush3.msra.mxu1 %v1992_v63 }
 0x381   :  { %2936 = vmatprep.subr.mxu1 %v3075_v11 }
 0x438   :  { %v1455_v1 = vpop.f32.mrb[16].mxu0 }
 0x439   :  { %v2885_v2 = vpop.f32.mrb[17].mxu0  ;;  %2924 = vmatmul.mubr.msk.f32.vlgmr.msra.gmra.mrb[24].mxu0 %vm681_vm2, %v1455_v1 }
 0x43a   :  { %2932 = vmatpush3.msra.mxu0 %v1993_v0  ;;  %2933 = vmatprep.mubr.msk.f32.mxu0 %vm3074_vm0, %v3075_v11 }
 0x43b   :  { %2941 = vmatprep.subr.mxu0 %v3075_v11 }
 0x43c   :  { %v1531_v4 = vpop.f32.mrb[16].mxu1 }
 0x43d   :  { %v2890_v5 = vpop.f32.mrb[17].mxu1  ;;  %2929 = vmatmul.mubr.msk.f32.vlgmr.msra.gmra.mrb[24].mxu1 %vm681_vm2, %v1531_v4 }
 0x43e   :  { %2937 = vmatpush3.msra.mxu1 %v1994_v3  ;;  %2938 = vmatprep.mubr.msk.f32.mxu1 %vm3074_vm0, %v3075_v11 }
 0x43f   :  { %2946 = vmatprep.subr.mxu1 %v3075_v11 }
 0x440   :  { %v1607_v7 = vpop.f32.mrb[18].mxu0 }
 0x441   :  { %v2895_v8 = vpop.f32.mrb[19].mxu0  ;;  %2934 = vmatmul.mubr.msk.f32.vlgmr.msra.gmra.mrb[26].mxu0 %vm681_vm2, %v1607_v7 }
 0x442   :  { %2942 = vmatpush3.msra.mxu0 %v1995_v6  ;;  %2943 = vmatprep.mubr.msk.f32.mxu0 %vm3074_vm0, %v3075_v11 }
 0x443   :  { %2951 = vmatprep.subr.mxu0 %v3075_v11 }
 0x444   :  { %v1683_v10 = vpop.f32.mrb[18].mxu1 }
 0x445   :  { %v2900_v12 = vpop.f32.mrb[19].mxu1  ;;  %2939 = vmatmul.mubr.msk.f32.vlgmr.msra.gmra.mrb[26].mxu1 %vm681_vm2, %v1683_v10 }
 0x446   :  { %2947 = vmatpush3.msra.mxu1 %v1996_v9  ;;  %2948 = vmatprep.mubr.msk.f32.mxu1 %vm3074_vm0, %v3075_v11 }
 0x447   :  { %2956 = vmatprep.subr.mxu1 %v3075_v11 }
 0x448   :  { %v1759_v14 = vpop.f32.mrb[20].mxu0 }
 0x449   :  { %v1835_v17 = vpop.f32.mrb[20].mxu1  ;;  %v2905_v18 = vpop.f32.mrb[21].mxu0  ;;  %2944 = vmatmul.mubr.msk.f32.vlgmr.msra.gmra.mrb[28].mxu0 %vm681_vm2, %v1759_v14 }
 0x44a   :  { %v2910_v20 = vpop.f32.mrb[21].mxu1  ;;  %2949 = vmatmul.mubr.msk.f32.vlgmr.msra.gmra.mrb[28].mxu1 %vm681_vm2, %v1835_v17  ;;  %2952 = vmatpush3.msra.mxu0 %v1997_v13 }
 0x44b   :  { %2957 = vmatpush3.msra.mxu1 %v1998_v15  ;;  %2953 = vmatprep.mubr.msk.f32.mxu0 %vm3074_vm0, %v3075_v11 }
 0x44c   :  { %2958 = vmatprep.mubr.msk.f32.mxu1 %vm3074_vm0, %v3075_v11 }
 0x450   :  { %v1911_v21 = vpop.f32.mrb[22].mxu0 }
 0x451   :  { %v1987_v22 = vpop.f32.mrb[22].mxu1  ;;  %v2915_v23 = vpop.f32.mrb[23].mxu0  ;;  %2954 = vmatmul.mubr.msk.f32.vlgmr.msra.gmra.mrb[30].mxu0 %vm681_vm2, %v1911_v21 }
 0x452   :  { %v2920_v24 = vpop.f32.mrb[23].mxu1  ;;  %2959 = vmatmul.mubr.msk.f32.vlgmr.msra.gmra.mrb[30].mxu1 %vm681_vm2, %v1987_v22 }
 0x50c   :  { %v2068_v25 = vpop.f32.mrb[24].mxu0 }
 0x50d   :  { %v2925_v26 = vpop.f32.mrb[25].mxu0 }
 0x510   :  { %v2141_v27 = vpop.f32.mrb[24].mxu1 }
 0x511   :  { %v2930_v28 = vpop.f32.mrb[25].mxu1 }
 0x514   :  { %v2214_v29 = vpop.f32.mrb[26].mxu0 }
 0x515   :  { %v2583_v30 = vadd.f32 %v2214_v29, %v2068_v25  ;;  %v2935_v31 = vpop.f32.mrb[27].mxu0 }
 0x518   :  { %v2287_v32 = vpop.f32.mrb[26].mxu1 }
 0x519   :  { %v2584_v33 = vadd.f32 %v2287_v32, %v2141_v27  ;;  %v2940_v34 = vpop.f32.mrb[27].mxu1 }
 0x51c   :  { %v2360_v35 = vpop.f32.mrb[28].mxu0 }
 0x51d   :  { %v2585_v11 = vadd.f32 %v2583_v30, %v2360_v35  ;;  %v2433_v36 = vpop.f32.mrb[28].mxu1  ;;  %v2945_v37 = vpop.f32.mrb[29].mxu0 }
 0x51e   :  { %v2586_v38 = vadd.f32 %v2584_v33, %v2433_v36  ;;  %v2950_v39 = vpop.f32.mrb[29].mxu1 }
 0x524   :  { %v2506_v40 = vpop.f32.mrb[30].mxu0 }
 0x525   :  { %v2587_v42 = vadd.f32 %v2585_v11, %v2506_v40  ;;  %v2579_v43 = vpop.f32.mrb[30].mxu1  ;;  %v2955_v19 = vpop.f32.mrb[31].mxu0 }
 0x526   :  { %v2588_v16 = vadd.f32 %v2586_v38, %v2579_v43  ;;  %v2960_v44 = vpop.f32.mrb[31].mxu1 }
 0x527   :  { %v2596_v45 = vadd.f32 %v2664_v41, %v2587_v42 }
 0x528   :  { %v2597_v46 = vadd.f32 %v2664_v41, %v2588_v16 }
 0x529   :  { %2598 = vst.msk [vmem:[#allocation2] sm:$0xff] %vm111_vm1, %v2596_v45 }
 0x52a   :  { %2599 = vst.msk [vmem:[#allocation2 + $0x8] sm:$0xff] %vm111_vm1, %v2597_v46 }
 0x52b   :  { %3060 = shalt.err (!%p3057_p4)
}
 0x52c   :  { %s3061_s19 = scalar_lea.hbm %s3519_s5, 256 }
 0x52d   :  { %p3062_p5 = scmp.ne.s32.totalorder %s3519_s5, %s3061_s19  ;;  %p3065_p6 = scmp.lt.u32.totalorder %s3061_s19, %s3519_s5 }
 0x52f   :  { %p3067_p7 = pnand %p3065_p6, %p3062_p5 }
 0x531   :  { %3070 = shalt.err (!%p3067_p7)
}
 0x532   :  { %s3079_s24 = smov 128   ;;  %s3080_s2 = smov 8  }
 0x533   :  { %2611 = dma.vmem_to_hbm [thread:$0]  %s2606_s16, 256, %s3519_s5, [#allocation3], %s3079_s24, %s3079_s24, %s3080_s2  }
 0x534   :  { %3071 = dma.done.wait [#allocation3], 256  }
 0x535   :  { %3072 = vsyncadd [#allocation3], 4294967040 }
 0x536   :  { %2615 = vsyncpa [#allocation3], 1 }

</bundles_post_ra>
